<compile_context>
chip_gen: v5e
topology: v5e:2x2
jax: 0.10.0
libtpu: 0.0.40
codegen_flags: <defaults>
</compile_context>

<pallas_src>
import jax
import jax.numpy as jnp
from jax.experimental import pallas as pl
from jax.experimental.pallas import tpu as pltpu


def _make_kernel(samples, hg, c_in, c_out, pad):
    """Kernel for one batch chunk of `samples` images."""
    r_in = c_in * hg          # LHS rows per sample
    r_out = c_out * hg        # output rows per sample

    def kernel(x_ref, sel_ref, o_ref):
        # x_ref  : (samples*r_in,  G*2W)  row-groups of 2G input rows per lane-row
        # sel_ref: (G*2W, G*Wo)           constant 0/1 selection matrix
        # o_ref  : (samples*r_out, G*Wo)  channel-padded, lane-dense output
        sub = jnp.dot(x_ref[...], sel_ref[...],
                      preferred_element_type=jnp.float32).astype(o_ref.dtype)
        lanes = o_ref.shape[-1]
        zeros = jnp.zeros((pad * hg, lanes), o_ref.dtype) if pad > 0 else None
        for s in range(samples):          # static unroll, small
            ob = s * r_out
            if pad > 0:
                o_ref[ob:ob + pad * hg, :] = zeros
                o_ref[ob + (pad + c_in) * hg:ob + r_out, :] = zeros
            o_ref[ob + pad * hg:ob + (pad + c_in) * hg, :] = \
                sub[s * r_in:(s + 1) * r_in, :]

    return kernel


def lambda_layer_forward(x, planes):
    """lambda x: F.pad(x[:,:,::2,::2], (0,0,0,0,planes//4,planes//4), 'constant', 0)"""
    B, C, H, W = x.shape
    if not jnp.issubdtype(x.dtype, jnp.floating):
        # TODO(synk): integer activations would need a non-MXU gather path
        #             (the v7x MXU has no integer mode).
        raise NotImplementedError("option-A shortcut kernel supports float dtypes only")
    assert H % 2 == 0 and W % 2 == 0, "canonical shortcut assumes even H, W"
    # TODO(synk): odd H/W (torch ::2 -> ceil sizes) is not handled by this layout.

    pad = planes // 4
    C_out = C + 2 * pad
    Ho, Wo = H // 2, W // 2

    # Fold G output rows into the lane dim (lane-dense blocks); G must divide
    # Ho.  Cap K = G*2W (MXU weight-load cost) and N = G*Wo (single MXU tile).
    G = 1
    for g in range(1, Ho + 1):
        if Ho % g == 0 and g * 2 * W <= 256 and g * Wo <= 128:
            G = g
    hg = Ho // G
    r_in = C * hg
    r_out = C_out * hg

    # Batch chunking: large contiguous DMAs, few grid steps, sublane-friendly
    # (multiple-of-8 or full) second-minor block dims, >=2 parallel steps.
    bytes_per_sample = (C * H * W + C_out * Ho * Wo) * x.dtype.itemsize
    target = 2 << 20
    valid = [bb for bb in range(1, B + 1)
             if B % bb == 0
             and (bb == B or ((bb * r_in) % 8 == 0 and (bb * r_out) % 8 == 0))]
    fitting = [bb for bb in valid if bb * bytes_per_sample <= target and bb <= 64]
    if fitting:
        par = [bb for bb in fitting if B // bb >= 2]
        Bb = max(par) if par else max(fitting)
    else:
        Bb = min(valid)
    grid = (B // Bb,)

    # Free (contiguous, no-transpose) reshape of the input.
    x2 = x.reshape(B * r_in, G * 2 * W)

    # Constant 0/1 selection matrix: output lane (g, j) <- input lane (g, 2j),
    # i.e. even column 2j of the even row 2g inside each group of 2G rows.
    # Dtype matches x so bf16 activations take the native MXU path; selection
    # by a 0/1 matrix is exact for floats either way.
    row = jnp.arange(G * 2 * W)[:, None]
    col = jnp.arange(G * Wo)[None, :]
    sel = ((row // (2 * W) == col // Wo) &
           (row % (2 * W) == 2 * (col % Wo))).astype(x.dtype)

    kernel = _make_kernel(Bb, hg, C, C_out, pad)
    out2 = pl.pallas_call(
        kernel,
        grid=grid,
        in_specs=[
            pl.BlockSpec((Bb * r_in, G * 2 * W), lambda i: (i, 0)),
            # Constant block -> fetched once, stays resident in VMEM.
            pl.BlockSpec((G * 2 * W, G * Wo), lambda i: (0, 0)),
        ],
        out_specs=pl.BlockSpec((Bb * r_out, G * Wo), lambda i: (i, 0)),
        out_shape=jax.ShapeDtypeStruct((B * r_out, G * Wo), x.dtype),
        compiler_params=pltpu.CompilerParams(dimension_semantics=("parallel",)),
    )(x2, sel)

    # Free reshape back to NCHW.
    return out2.reshape(B, C_out, Ho, Wo)


def reference_forward(x, planes):
    """Pure-JAX reference of the same lambda (matches torch F.pad semantics)."""
    p = planes // 4
    sub = x[:, :, ::2, ::2]
    return jnp.pad(sub, ((0, 0), (p, p), (0, 0), (0, 0)))


if __name__ == "__main__":
    # Small shapes consistent with the module's use (CIFAR ResNet shortcut).
    B, C, H, W = 2, 4, 16, 16
    PLANES = 8                      # pad channels by planes//4 = 2 per side -> C_out = 8

    key = jax.random.PRNGKey(0)
    x = jax.random.normal(key, (B, C, H, W), jnp.float32)

    fwd = jax.jit(lambda_layer_forward, static_argnums=(1,))
    out = jax.block_until_ready(fwd(x, PLANES))

    ref = reference_forward(x, PLANES)
    assert out.shape == (B, C + 2 * (PLANES // 4), H // 2, W // 2), out.shape
    assert bool(jnp.allclose(out, ref, atol=1e-6, rtol=1e-6)), "mismatch vs reference"

    print("KERNEL_OK")
</pallas_src>

<mosaic_0001>
module attributes {stable_mosaic.version = 11 : i64} {
  func.func @kernel(%arg0: i32, %arg1: memref<8x256xf32, #tpu.memory_space<vmem>>, %arg2: memref<256x64xf32, #tpu.memory_space<vmem>>, %arg3: memref<16x64xf32, #tpu.memory_space<vmem>>) attributes {dimension_semantics = [#tpu.dimension_semantics<parallel>], iteration_bounds = array<i64: 1>, scalar_prefetch = 0 : i64, scratch_operands = 0 : i64, tpu.core_type = #tpu.core_type<tc>, window_params = [{transform_indices = @transform_0, window_bounds = array<i64: 8, 256>}, {pipeline_mode = #tpu.pipeline_mode<synchronous>, transform_indices = @transform_1, window_bounds = array<i64: 256, 64>}, {transform_indices = @transform_2, window_bounds = array<i64: 16, 64>}]} {
    %c0 = arith.constant 0 : index
    %c0_0 = arith.constant 0 : index
    %0 = vector.load %arg1[%c0, %c0_0] : memref<8x256xf32, #tpu.memory_space<vmem>>, vector<8x256xf32>
    %c0_1 = arith.constant 0 : index
    %c0_2 = arith.constant 0 : index
    %1 = vector.load %arg2[%c0_1, %c0_2] : memref<256x64xf32, #tpu.memory_space<vmem>>, vector<256x64xf32>
    %cst = arith.constant dense<0.000000e+00> : vector<8x64xf32>
    %2 = tpu.matmul %0, %1, %cst {dimension_numbers = #tpu.dot_dimension_numbers<[1], [0], [0], [1], [0, 0, 1, 1], [], []>} : vector<8x256xf32>, vector<256x64xf32>, vector<8x64xf32> -> vector<8x64xf32>
    %cst_3 = arith.constant 0.000000e+00 : f32
    %3 = vector.broadcast %cst_3 : f32 to vector<2x64xf32>
    %c0_4 = arith.constant 0 : index
    %c0_5 = arith.constant 0 : index
    %4 = vector.load %arg3[%c0_4, %c0_5] : memref<16x64xf32, #tpu.memory_space<vmem>>, vector<2x64xf32>
    tpu.vector_store %arg3[%c0_4, %c0_5], %3 {strides = array<i32>} : memref<16x64xf32, #tpu.memory_space<vmem>>, vector<2x64xf32>,
    %c6 = arith.constant 6 : index
    %c0_6 = arith.constant 0 : index
    %5 = vector.load %arg3[%c6, %c0_6] : memref<16x64xf32, #tpu.memory_space<vmem>>, vector<2x64xf32>
    tpu.vector_store %arg3[%c6, %c0_6], %3 {strides = array<i32>} : memref<16x64xf32, #tpu.memory_space<vmem>>, vector<2x64xf32>,
    %6 = vector.extract_strided_slice %2 {offsets = [0, 0], sizes = [4, 64], strides = [1, 1]} : vector<8x64xf32> to vector<4x64xf32>
    %c2 = arith.constant 2 : index
    %c0_7 = arith.constant 0 : index
    %7 = vector.load %arg3[%c2, %c0_7] : memref<16x64xf32, #tpu.memory_space<vmem>>, vector<4x64xf32>
    tpu.vector_store %arg3[%c2, %c0_7], %6 {strides = array<i32>} : memref<16x64xf32, #tpu.memory_space<vmem>>, vector<4x64xf32>,
    %c8 = arith.constant 8 : index
    %c0_8 = arith.constant 0 : index
    %8 = vector.load %arg3[%c8, %c0_8] : memref<16x64xf32, #tpu.memory_space<vmem>>, vector<2x64xf32>
    tpu.vector_store %arg3[%c8, %c0_8], %3 {strides = array<i32>} : memref<16x64xf32, #tpu.memory_space<vmem>>, vector<2x64xf32>,
    %c14 = arith.constant 14 : index
    %c0_9 = arith.constant 0 : index
    %9 = vector.load %arg3[%c14, %c0_9] : memref<16x64xf32, #tpu.memory_space<vmem>>, vector<2x64xf32>
    tpu.vector_store %arg3[%c14, %c0_9], %3 {strides = array<i32>} : memref<16x64xf32, #tpu.memory_space<vmem>>, vector<2x64xf32>,
    %10 = vector.extract_strided_slice %2 {offsets = [4, 0], sizes = [4, 64], strides = [1, 1]} : vector<8x64xf32> to vector<4x64xf32>
    %c10 = arith.constant 10 : index
    %c0_10 = arith.constant 0 : index
    %11 = vector.load %arg3[%c10, %c0_10] : memref<16x64xf32, #tpu.memory_space<vmem>>, vector<4x64xf32>
    tpu.vector_store %arg3[%c10, %c0_10], %10 {strides = array<i32>} : memref<16x64xf32, #tpu.memory_space<vmem>>, vector<4x64xf32>,
    return
  }
  func.func @transform_0(%arg0: i32) -> (i32, i32) {
    %c0_i32 = arith.constant 0 : i32
    %c0_i32_0 = arith.constant 0 : i32
    return %arg0, %c0_i32 : i32, i32
  }
  func.func @transform_1(%arg0: i32) -> (i32, i32) {
    %c0_i32 = arith.constant 0 : i32
    %c0_i32_0 = arith.constant 0 : i32
    %c0_i32_1 = arith.constant 0 : i32
    return %c0_i32, %c0_i32_0 : i32, i32
  }
  func.func @transform_2(%arg0: i32) -> (i32, i32) {
    %c0_i32 = arith.constant 0 : i32
    %c0_i32_0 = arith.constant 0 : i32
    return %arg0, %c0_i32 : i32, i32
  }
}

</mosaic_0001>

<bundles_post_ra>
// kernel: lambda_layer_forward.1
= control target key start
LH: loop header
LB: loop body
LE: loop exit
PB: predicated region body
PF: predicated region fallthrough
CT: control target
= control target key end

     0   :  { %vm85_vm0 = vcmask 517120   ;;  %v99_v34 = vmov 0.0   ;;  %vm88_vm1 = vcmask 519168   ;;  %vm92_vm2 = vcmask 523268   ;;  %s235_s1 = inlined_call_operand.vmem [shape: f32[256,64], index: 1, kind: input, shape index: {}]   ;;  %s236_s0 = inlined_call_operand.vmem [shape: f32[8,256], index: 0, kind: input, shape index: {}]   ;;  %s237_s2 = inlined_call_operand.vmem [shape: f32[16,64], index: 2, kind: output, shape index: {}]  }
   0x1   :  { %v28_v0 = vld [vmem:[%s235_s1 + $0x78] sm:$0xff]  ;;  %v27_v2 = vld [vmem:[%s235_s1 + $0x70] sm:$0xff]  ;;  %v26_v4 = vld [vmem:[%s235_s1 + $0x68] sm:$0xff]  ;;  %86 = vst.msk [vmem:[%s237_s2] sm:$0x3] %vm85_vm0, %v99_v34 }
   0x2   :  { %v44_v1 = vld [vmem:[%s235_s1 + $0xf8] sm:$0xff]  ;;  %45 = vmatpush.msra.mxu0 %v28_v0  ;;  %v43_v3 = vld [vmem:[%s235_s1 + $0xf0] sm:$0xff]  ;;  %v42_v5 = vld [vmem:[%s235_s1 + $0xe8] sm:$0xff]  ;;  %87 = vst.msk [vmem:[%s237_s2 + $0x6] sm:$0x3] %vm85_vm0, %v99_v34 }
   0x3   :  { %65 = vmatpush.msra.mxu1 %v44_v1  ;;  %v25_v6 = vld [vmem:[%s235_s1 + $0x60] sm:$0xff]  ;;  %v24_v8 = vld [vmem:[%s235_s1 + $0x58] sm:$0xff]  ;;  %v23_v10 = vld [vmem:[%s235_s1 + $0x50] sm:$0xff]  ;;  %90 = vst.msk [vmem:[%s237_s2 + $0x8] sm:$0x3] %vm85_vm0, %v99_v34 }
   0x4   :  { %46 = vmatpush.msra.mxu0 %v27_v2  ;;  %v41_v7 = vld [vmem:[%s235_s1 + $0xe0] sm:$0xff]  ;;  %v40_v9 = vld [vmem:[%s235_s1 + $0xd8] sm:$0xff]  ;;  %v39_v11 = vld [vmem:[%s235_s1 + $0xd0] sm:$0xff]  ;;  %91 = vst.msk [vmem:[%s237_s2 + $0xe] sm:$0x3] %vm85_vm0, %v99_v34 }
   0x5   :  { %66 = vmatpush.msra.mxu1 %v43_v3  ;;  %v22_v12 = vld [vmem:[%s235_s1 + $0x48] sm:$0xff]  ;;  %v21_v14 = vld [vmem:[%s235_s1 + $0x40] sm:$0xff]  ;;  %v20_v16 = vld [vmem:[%s235_s1 + $0x38] sm:$0xff] }
   0x6   :  { %47 = vmatpush.msra.mxu0 %v26_v4  ;;  %v38_v13 = vld [vmem:[%s235_s1 + $0xc8] sm:$0xff]  ;;  %v37_v15 = vld [vmem:[%s235_s1 + $0xc0] sm:$0xff]  ;;  %v36_v17 = vld [vmem:[%s235_s1 + $0xb8] sm:$0xff] }
   0x7   :  { %67 = vmatpush.msra.mxu1 %v42_v5  ;;  %v19_v18 = vld [vmem:[%s235_s1 + $0x30] sm:$0xff]  ;;  %v18_v20 = vld [vmem:[%s235_s1 + $0x28] sm:$0xff]  ;;  %v17_v22 = vld [vmem:[%s235_s1 + $0x20] sm:$0xff] }
   0x8   :  { %48 = vmatpush.msra.mxu0 %v25_v6  ;;  %v35_v19 = vld [vmem:[%s235_s1 + $0xb0] sm:$0xff]  ;;  %v34_v21 = vld [vmem:[%s235_s1 + $0xa8] sm:$0xff]  ;;  %v33_v23 = vld [vmem:[%s235_s1 + $0xa0] sm:$0xff] }
   0x9   :  { %68 = vmatpush.msra.mxu1 %v41_v7  ;;  %v16_v24 = vld [vmem:[%s235_s1 + $0x18] sm:$0xff]  ;;  %v15_v26 = vld [vmem:[%s235_s1 + $0x10] sm:$0xff]  ;;  %v14_v28 = vld [vmem:[%s235_s1 + $0x8] sm:$0xff] }
   0xa   :  { %49 = vmatpush.msra.mxu0 %v24_v8  ;;  %v32_v25 = vld [vmem:[%s235_s1 + $0x98] sm:$0xff]  ;;  %v31_v27 = vld [vmem:[%s235_s1 + $0x90] sm:$0xff]  ;;  %v30_v29 = vld [vmem:[%s235_s1 + $0x88] sm:$0xff] }
   0xb   :  { %69 = vmatpush.msra.mxu1 %v40_v9  ;;  %v13_v30 = vld [vmem:[%s235_s1] sm:$0xff]  ;;  %v12_v33 = vld [vmem:[%s236_s0 + $0x8] sm:$0xff] }
   0xc   :  { %50 = vmatpush.msra.mxu0 %v23_v10  ;;  %v29_v31 = vld [vmem:[%s235_s1 + $0x80] sm:$0xff] }
   0xd   :  { %70 = vmatpush.msra.mxu1 %v39_v11  ;;  %v11_v32 = vld [vmem:[%s236_s0] sm:$0xff] }
   0xe   :  { %51 = vmatpush.msra.mxu0 %v22_v12 }
   0xf   :  { %71 = vmatpush.msra.mxu1 %v38_v13 }
  0x10   :  { %52 = vmatpush.msra.mxu0 %v21_v14 }
  0x11   :  { %72 = vmatpush.msra.mxu1 %v37_v15 }
  0x12   :  { %53 = vmatpush.msra.mxu0 %v20_v16 }
  0x13   :  { %73 = vmatpush.msra.mxu1 %v36_v17 }
  0x14   :  { %54 = vmatpush.msra.mxu0 %v19_v18 }
  0x15   :  { %74 = vmatpush.msra.mxu1 %v35_v19 }
  0x16   :  { %55 = vmatpush.msra.mxu0 %v18_v20 }
  0x17   :  { %75 = vmatpush.msra.mxu1 %v34_v21 }
  0x18   :  { %56 = vmatpush.msra.mxu0 %v17_v22 }
  0x19   :  { %76 = vmatpush.msra.mxu1 %v33_v23 }
  0x1a   :  { %57 = vmatpush.msra.mxu0 %v16_v24 }
  0x1b   :  { %77 = vmatpush.msra.mxu1 %v32_v25 }
  0x1c   :  { %58 = vmatpush.msra.mxu0 %v15_v26 }
  0x1d   :  { %78 = vmatpush.msra.mxu1 %v31_v27 }
  0x1e   :  { %59 = vmatpush.msra.mxu0 %v14_v28 }
  0x1f   :  { %79 = vmatpush.msra.mxu1 %v30_v29 }
  0x20   :  { %60 = vmatpush.msra.mxu0 %v13_v30 }
  0x21   :  { %80 = vmatpush.msra.mxu1 %v29_v31  ;;  %61 = vmatmul.f32.vlgmr.msra.gmra.mxu0 %v11_v32 }
  0x22   :  { %81 = vmatmul.f32.vlgmr.msra.gmra.mxu1 %v12_v33 }
  0x9e   :  { %v62_v35 = vpop.f32.mrf.mxu0 }
  0x9f   :  { %v82_v36 = vpop.f32.mrf.mxu1 }
  0xa0   :  { %v83_v37 = vadd.f32 %v82_v36, %v62_v35 }
  0xa2   :  { %89 = vst.msk [vmem:[%s237_s2 + $0x2] sm:$0xf] %vm88_vm1, %v83_v37 }
  0xa3   :  { %93 = vst.msk [vmem:[%s237_s2 + $0x6] sm:$0xf0] %vm92_vm2, %v83_v37 }

</bundles_post_ra>
